<compile_context>
chip_gen: v5e
topology: v5e:2x2
jax: 0.10.0
libtpu: 0.0.40
codegen_flags: <defaults>
</compile_context>

<pallas_src>
import jax
import jax.numpy as jnp
from jax.experimental import pallas as pl
from jax.experimental.pallas import tpu as pltpu

LANES = 128                  # vreg lane width; batch elements per slab row
PAIR = 2 * LANES             # 256 lanes per slab row (x0/x1 interleaved)
MAX_BLOCK_ROWS = 4096        # 4 MiB f32 input block + 2 MiB output block
MIN_BLOCK_ROWS = 8           # sublane multiple


def _round_up(n, m):
    return ((n + m - 1) // m) * m


def _selection_matrix(weight):
    """(256, 128) f32 with S[2j, j] = w00, S[2j+1, j] = w01, else 0.

    slab_row @ S de-interleaves the (x0, x1) lane pairs, applies the weights
    and compacts the 128 results per row into dense lanes in one MXU pass.
    Depends only on the weights, so callers may hoist it across calls.
    """
    k = jnp.arange(PAIR, dtype=jnp.int32)[:, None]    # (256, 1)
    j = jnp.arange(LANES, dtype=jnp.int32)[None, :]   # (1, 128)
    w0 = weight[0, 0].astype(jnp.float32)
    w1 = weight[0, 1].astype(jnp.float32)
    zero = jnp.float32(0.0)
    return jnp.where(k == 2 * j, w0, zero) + jnp.where(k == 2 * j + 1, w1, zero)


def _linear_kernel(x_ref, s_ref, b_ref, o_ref):
    # x_ref: (block_rows, 256) f32, interleaved [x0, x1, x0, x1, ...]
    # s_ref: (256, 128) f32 constant selection/weight matrix
    # b_ref: (1, 128) f32 bias row (broadcast over sublanes)
    # o_ref: (block_rows, 128) f32, lane-dense y in exact batch order
    o_ref[...] = (
        jnp.dot(x_ref[...], s_ref[...], preferred_element_type=jnp.float32)
        + b_ref[...])


def linear_forward(x, weight, bias, *, max_block_rows=MAX_BLOCK_ROWS):
    """x: (B, 2) f32, weight: (1, 2) f32, bias: (1,) f32 -> (B, 1) f32."""
    B, IN = x.shape
    assert IN == 2 and weight.shape == (1, 2) and bias.shape == (1,)

    xf = x if x.dtype == jnp.float32 else x.astype(jnp.float32)

    # Pad the batch only up to a lane multiple (<= 127 rows), and to at least
    # 8 slab rows (1024 elements) so blocks stay sublane-aligned.  For
    # B % 128 == 0 (the common large-batch case) there is no copy at all.
    rows = max(_round_up(B, LANES) // LANES, MIN_BLOCK_ROWS)
    Bp = rows * LANES
    if Bp != B:
        xf = jnp.pad(xf, ((0, Bp - B), (0, 0)))

    # Free reshape: row r holds batch elements [128r, 128r+128) interleaved.
    slab = xf.reshape(rows, PAIR)

    # Big tiles to amortize per-step overhead, but >= 2 tiles whenever
    # possible so the batch axis can be sharded across TensorCores (v7x).
    block_rows = min(max_block_rows,
                     max(MIN_BLOCK_ROWS,
                         _round_up(pl.cdiv(rows, 2), MIN_BLOCK_ROWS)))
    num_blocks = pl.cdiv(rows, block_rows)   # ragged last block is fine

    sel = _selection_matrix(weight)                     # hoistable
    bias_row = jnp.tile(bias.astype(jnp.float32).reshape(1, 1), (1, LANES))

    y2d = pl.pallas_call(
        _linear_kernel,
        out_shape=jax.ShapeDtypeStruct((rows, LANES), jnp.float32),
        grid=(num_blocks,),
        in_specs=[
            pl.BlockSpec((block_rows, PAIR), lambda i: (i, 0)),
            pl.BlockSpec((PAIR, LANES), lambda i: (0, 0)),   # loaded once
            pl.BlockSpec((1, LANES), lambda i: (0, 0)),      # loaded once
        ],
        out_specs=pl.BlockSpec((block_rows, LANES), lambda i: (i, 0)),
        compiler_params=pltpu.CompilerParams(
            dimension_semantics=("parallel",),
            vmem_limit_bytes=32 * 1024 * 1024),  # v5e default is only 16 MiB
    )(slab, sel, bias_row)

    y = y2d.reshape(Bp, 1)
    return y if Bp == B else y[:B]


if __name__ == "__main__":
    key = jax.random.PRNGKey(0)
    k_x, k_w, k_b = jax.random.split(key, 3)

    IN, OUT = 2, 1

    # Deterministic parameter init mimicking torch.nn.Linear default:
    # U(-1/sqrt(in_features), 1/sqrt(in_features))
    bound = 1.0 / (IN ** 0.5)
    weight = jax.random.uniform(k_w, (OUT, IN), jnp.float32, -bound, bound)
    bias = jax.random.uniform(k_b, (OUT,), jnp.float32, -bound, bound)

    def reference(xv):
        # Exact f32 elementwise reference (no XLA dot precision ambiguity).
        return xv[:, 0:1] * weight[0, 0] + xv[:, 1:2] * weight[0, 1] + bias

    # Small shape consistent with the module.
    x = jax.random.normal(k_x, (8, IN), jnp.float32)
    y = jax.block_until_ready(linear_forward(x, weight, bias))
    assert y.shape == (8, OUT)
    assert jnp.allclose(y, reference(x), atol=1e-5, rtol=1e-5), "mismatch (B=8)"

    # Batch that doesn't divide the lane width (exercises the pad-to-128 path).
    x2 = jax.random.normal(k_x, (300, IN), jnp.float32)
    y2 = jax.block_until_ready(linear_forward(x2, weight, bias))
    assert jnp.allclose(y2, reference(x2), atol=1e-5, rtol=1e-5), "mismatch (B=300)"

    # Multi-tile grid with a ragged (partial) last block.
    x3 = jax.random.normal(k_x, (2500, IN), jnp.float32)
    y3 = jax.block_until_ready(linear_forward(x3, weight, bias))
    assert jnp.allclose(y3, reference(x3), atol=1e-5, rtol=1e-5), "mismatch (B=2500)"

    print("KERNEL_OK")
</pallas_src>

<mosaic_0001>
module attributes {stable_mosaic.version = 11 : i64} {
  func.func @_linear_kernel(%arg0: i32, %arg1: memref<8x256xf32, #tpu.memory_space<vmem>>, %arg2: memref<256x128xf32, #tpu.memory_space<vmem>>, %arg3: memref<1x128xf32, #tpu.memory_space<vmem>>, %arg4: memref<8x128xf32, #tpu.memory_space<vmem>>) attributes {dimension_semantics = [#tpu.dimension_semantics<parallel>], iteration_bounds = array<i64: 1>, scalar_prefetch = 0 : i64, scratch_operands = 0 : i64, tpu.core_type = #tpu.core_type<tc>, window_params = [{transform_indices = @transform_0, window_bounds = array<i64: 8, 256>}, {pipeline_mode = #tpu.pipeline_mode<synchronous>, transform_indices = @transform_1, window_bounds = array<i64: 256, 128>}, {pipeline_mode = #tpu.pipeline_mode<synchronous>, transform_indices = @transform_2, window_bounds = array<i64: 1, 128>}, {transform_indices = @transform_3, window_bounds = array<i64: 8, 128>}]} {
    %c0 = arith.constant 0 : index
    %c0_0 = arith.constant 0 : index
    %0 = vector.load %arg1[%c0, %c0_0] : memref<8x256xf32, #tpu.memory_space<vmem>>, vector<8x256xf32>
    %c0_1 = arith.constant 0 : index
    %c0_2 = arith.constant 0 : index
    %1 = vector.load %arg2[%c0_1, %c0_2] : memref<256x128xf32, #tpu.memory_space<vmem>>, vector<256x128xf32>
    %cst = arith.constant dense<0.000000e+00> : vector<8x128xf32>
    %2 = tpu.matmul %0, %1, %cst {dimension_numbers = #tpu.dot_dimension_numbers<[1], [0], [0], [1], [0, 0, 1, 1], [], []>} : vector<8x256xf32>, vector<256x128xf32>, vector<8x128xf32> -> vector<8x128xf32>
    %c0_3 = arith.constant 0 : index
    %c0_4 = arith.constant 0 : index
    %3 = vector.load %arg3[%c0_3, %c0_4] : memref<1x128xf32, #tpu.memory_space<vmem>>, vector<1x128xf32>
    %4 = vector.broadcast %3 : vector<1x128xf32> to vector<8x128xf32>
    %5 = arith.addf %2, %4 : vector<8x128xf32>
    %c0_5 = arith.constant 0 : index
    %c0_6 = arith.constant 0 : index
    %6 = vector.load %arg4[%c0_5, %c0_6] : memref<8x128xf32, #tpu.memory_space<vmem>>, vector<8x128xf32>
    tpu.vector_store %arg4[%c0_5, %c0_6], %5 {strides = array<i32>} : memref<8x128xf32, #tpu.memory_space<vmem>>, vector<8x128xf32>,
    return
  }
  func.func @transform_0(%arg0: i32) -> (i32, i32) {
    %c0_i32 = arith.constant 0 : i32
    %c0_i32_0 = arith.constant 0 : i32
    return %arg0, %c0_i32 : i32, i32
  }
  func.func @transform_1(%arg0: i32) -> (i32, i32) {
    %c0_i32 = arith.constant 0 : i32
    %c0_i32_0 = arith.constant 0 : i32
    %c0_i32_1 = arith.constant 0 : i32
    return %c0_i32, %c0_i32_0 : i32, i32
  }
  func.func @transform_2(%arg0: i32) -> (i32, i32) {
    %c0_i32 = arith.constant 0 : i32
    %c0_i32_0 = arith.constant 0 : i32
    %c0_i32_1 = arith.constant 0 : i32
    return %c0_i32, %c0_i32_0 : i32, i32
  }
  func.func @transform_3(%arg0: i32) -> (i32, i32) {
    %c0_i32 = arith.constant 0 : i32
    %c0_i32_0 = arith.constant 0 : i32
    return %arg0, %c0_i32 : i32, i32
  }
}

</mosaic_0001>

<bundles_post_ra>
// kernel: tpu_custom_call.1
= control target key start
LH: loop header
LB: loop body
LE: loop exit
PB: predicated region body
PF: predicated region fallthrough
CT: control target
= control target key end

     0   :  { %8 = vsyncpa [#allocation3], 0  ;;  %s263_s0 = inlined_call_operand.hbm [shape: f32[8,256], index: 0, kind: input, shape index: {}]   ;;  %s264_s1 = inlined_call_operand.hbm [shape: f32[256,128], index: 1, kind: input, shape index: {}]   ;;  %s265_s2 = inlined_call_operand.vmem [shape: f32[1,128], index: 2, kind: input, shape index: {}]   ;;  %s266_s3 = inlined_call_operand.hbm [shape: f32[8,128], index: 3, kind: output, shape index: {}]  }
   0x1   :  { %9 = vsyncpa [#allocation6], 0 }
   0x2   :  { %10 = vsyncpa [#allocation4], 0  ;;  %s16_s14 = sshll.u32 %s263_s0, 4  ;;  %s226_s15 = smov [#allocation2]   ;;  %s17_s14 = int_to_ptr.hbm [resolvable:$true] %s16_s14 }
   0x3   :  { %s18_s16 = sshll.u32 %s226_s15, 4  ;;  %s26_s19 = sshll.u32 %s264_s1, 4  ;;  %s19_s16 = int_to_ptr.vmem [resolvable:$true] %s18_s16  ;;  %s27_s19 = int_to_ptr.hbm [resolvable:$true] %s26_s19 }
   0x4   :  { %21 = dma.hbm_to_vmem [thread:$0]  %s17_s14, 256, %s19_s16, [#allocation3]  }
   0x5   :  { %s227_s20 = smov [#allocation5]   ;;  %s228_s22 = smov 128  }
   0x6   :  { %s28_s21 = sshll.u32 %s227_s20, 4  ;;  %s229_s23 = smov 8   ;;  %s29_s21 = int_to_ptr.vmem [resolvable:$true] %s28_s21 }
   0x7   :  { %34 = dma.hbm_to_vmem [thread:$0]  %s27_s19, 4096, %s29_s21, [#allocation6], %s228_s22, %s228_s22, %s229_s23  }
   0x8   :  { %220 = dma.done.wait [#allocation3], 256  }
   0x9   :  { %221 = vsyncadd [#allocation3], 4294967040 }
   0xa   :  { %222 = dma.done.wait [#allocation6], 4096  }
   0xb   :  { %223 = vsyncadd [#allocation6], 4294963200  ;;  %v62_v0 = vld [vmem:[#allocation5 + $0x78] sm:$0xff]  ;;  %v61_v1 = vld [vmem:[#allocation5 + $0x70] sm:$0xff]  ;;  %s230_s24 = smov [#allocation7]   ;;  %s131_s28 = sshll.u32 %s266_s3, 4  ;;  %s132_s28 = int_to_ptr.hbm [resolvable:$true] %s131_s28 }
   0xc   :  { %v78_v2 = vld [vmem:[#allocation5 + $0xf8] sm:$0xff]  ;;  %83 = vmatpush.msra.mxu0 %v62_v0  ;;  %v77_v3 = vld [vmem:[#allocation5 + $0xf0] sm:$0xff]  ;;  %v60_v4 = vld [vmem:[#allocation5 + $0x68] sm:$0xff]  ;;  %s129_s25 = sshll.u32 %s230_s24, 4  ;;  %s130_s25 = int_to_ptr.vmem [resolvable:$true] %s129_s25 }
   0xd   :  { %103 = vmatpush.msra.mxu1 %v78_v2  ;;  %v76_v5 = vld [vmem:[#allocation5 + $0xe8] sm:$0xff]  ;;  %v59_v6 = vld [vmem:[#allocation5 + $0x60] sm:$0xff]  ;;  %v58_v8 = vld [vmem:[#allocation5 + $0x58] sm:$0xff] }
   0xe   :  { %84 = vmatpush.msra.mxu0 %v61_v1  ;;  %v75_v7 = vld [vmem:[#allocation5 + $0xe0] sm:$0xff]  ;;  %v74_v9 = vld [vmem:[#allocation5 + $0xd8] sm:$0xff]  ;;  %v57_v10 = vld [vmem:[#allocation5 + $0x50] sm:$0xff] }
   0xf   :  { %104 = vmatpush.msra.mxu1 %v77_v3  ;;  %v73_v11 = vld [vmem:[#allocation5 + $0xd0] sm:$0xff]  ;;  %v56_v12 = vld [vmem:[#allocation5 + $0x48] sm:$0xff]  ;;  %v55_v14 = vld [vmem:[#allocation5 + $0x40] sm:$0xff] }
  0x10   :  { %85 = vmatpush.msra.mxu0 %v60_v4  ;;  %v72_v13 = vld [vmem:[#allocation5 + $0xc8] sm:$0xff]  ;;  %v71_v15 = vld [vmem:[#allocation5 + $0xc0] sm:$0xff]  ;;  %v54_v16 = vld [vmem:[#allocation5 + $0x38] sm:$0xff] }
  0x11   :  { %105 = vmatpush.msra.mxu1 %v76_v5  ;;  %v70_v17 = vld [vmem:[#allocation5 + $0xb8] sm:$0xff]  ;;  %v53_v18 = vld [vmem:[#allocation5 + $0x30] sm:$0xff]  ;;  %v52_v20 = vld [vmem:[#allocation5 + $0x28] sm:$0xff] }
  0x12   :  { %86 = vmatpush.msra.mxu0 %v59_v6  ;;  %v69_v19 = vld [vmem:[#allocation5 + $0xb0] sm:$0xff]  ;;  %v68_v21 = vld [vmem:[#allocation5 + $0xa8] sm:$0xff]  ;;  %v51_v22 = vld [vmem:[#allocation5 + $0x20] sm:$0xff] }
  0x13   :  { %106 = vmatpush.msra.mxu1 %v75_v7  ;;  %v67_v23 = vld [vmem:[#allocation5 + $0xa0] sm:$0xff]  ;;  %v50_v24 = vld [vmem:[#allocation5 + $0x18] sm:$0xff]  ;;  %v49_v26 = vld [vmem:[#allocation5 + $0x10] sm:$0xff] }
  0x14   :  { %87 = vmatpush.msra.mxu0 %v58_v8  ;;  %v66_v25 = vld [vmem:[#allocation5 + $0x98] sm:$0xff]  ;;  %v65_v27 = vld [vmem:[#allocation5 + $0x90] sm:$0xff]  ;;  %v48_v28 = vld [vmem:[#allocation5 + $0x8] sm:$0xff] }
  0x15   :  { %107 = vmatpush.msra.mxu1 %v74_v9  ;;  %v64_v29 = vld [vmem:[#allocation5 + $0x88] sm:$0xff]  ;;  %v47_v30 = vld [vmem:[#allocation5] sm:$0xff]  ;;  %v45_v32 = vld [vmem:[#allocation2] sm:$0xff] }
  0x16   :  { %88 = vmatpush.msra.mxu0 %v57_v10  ;;  %v63_v31 = vld [vmem:[#allocation5 + $0x80] sm:$0xff]  ;;  %v46_v33 = vld [vmem:[#allocation2 + $0x8] sm:$0xff]  ;;  %v147_v34 = vld [vmem:[%s265_s2] ss:$0 sm:$0xff] }
  0x17   :  { %108 = vmatpush.msra.mxu1 %v73_v11 }
  0x18   :  { %89 = vmatpush.msra.mxu0 %v56_v12 }
  0x19   :  { %109 = vmatpush.msra.mxu1 %v72_v13 }
  0x1a   :  { %90 = vmatpush.msra.mxu0 %v55_v14 }
  0x1b   :  { %110 = vmatpush.msra.mxu1 %v71_v15 }
  0x1c   :  { %91 = vmatpush.msra.mxu0 %v54_v16 }
  0x1d   :  { %111 = vmatpush.msra.mxu1 %v70_v17 }
  0x1e   :  { %92 = vmatpush.msra.mxu0 %v53_v18 }
  0x1f   :  { %112 = vmatpush.msra.mxu1 %v69_v19 }
  0x20   :  { %93 = vmatpush.msra.mxu0 %v52_v20 }
  0x21   :  { %113 = vmatpush.msra.mxu1 %v68_v21 }
  0x22   :  { %94 = vmatpush.msra.mxu0 %v51_v22 }
  0x23   :  { %114 = vmatpush.msra.mxu1 %v67_v23 }
  0x24   :  { %95 = vmatpush.msra.mxu0 %v50_v24 }
  0x25   :  { %115 = vmatpush.msra.mxu1 %v66_v25 }
  0x26   :  { %96 = vmatpush.msra.mxu0 %v49_v26 }
  0x27   :  { %116 = vmatpush.msra.mxu1 %v65_v27 }
  0x28   :  { %97 = vmatpush.msra.mxu0 %v48_v28 }
  0x29   :  { %117 = vmatpush.msra.mxu1 %v64_v29 }
  0x2a   :  { %98 = vmatpush.msra.mxu0 %v47_v30 }
  0x2b   :  { %118 = vmatpush.msra.mxu1 %v63_v31  ;;  %99 = vmatmul.f32.vlgmr.msra.gmra.mxu0 %v45_v32 }
  0x2c   :  { %119 = vmatmul.f32.vlgmr.msra.gmra.mxu1 %v46_v33 }
  0xa8   :  { %v100_v35 = vpop.f32.mrf.mxu0 }
  0xa9   :  { %v120_v36 = vpop.f32.mrf.mxu1  ;;  %v101_v37 = vadd.f32 %v147_v34, %v100_v35 }
  0xab   :  { %v121_v38 = vadd.f32 %v120_v36, %v101_v37 }
  0xad   :  { %123 = vst [vmem:[#allocation7] sm:$0xff] %v121_v38 }
  0xae   :  { %134 = dma.vmem_to_hbm [thread:$0]  %s130_s25, 128, %s132_s28, [#allocation4]  }
  0xaf   :  { %224 = dma.done.wait [#allocation4], 128  }
  0xb0   :  { %225 = vsyncadd [#allocation4], 4294967168 }
  0xb1   :  { %139 = vsyncpa [#allocation3], 1 }
  0xb2   :  { %140 = vsyncpa [#allocation6], 1 }
  0xb3   :  { %141 = vsyncpa [#allocation4], 1 }

</bundles_post_ra>
